<compile_context>
chip_gen: v5e
topology: v5e:2x2
jax: 0.10.0
libtpu: 0.0.40
codegen_flags: <defaults>
</compile_context>

<pallas_src>
import jax
import jax.numpy as jnp
from jax.experimental import pallas as pl
from jax.experimental.pallas import tpu as pltpu


def ffwd_kernel(x_ref, w1_ref, b1_ref, w2_ref, b2_ref, o_ref, acc_ref):
    # x_ref : (tm, C)     w1_ref: (C, th)    b1_ref: (1, th)
    # w2_ref: (th, C)     b2_ref: (1, C)     o_ref : (tm, C)
    # acc_ref: (tm, C) f32 scratch, accumulates over the hidden (hk) grid axis.
    hk = pl.program_id(1)

    @pl.when(hk == 0)
    def _init():
        # Fold the second bias into the accumulator init.
        acc_ref[...] = jnp.broadcast_to(
            b2_ref[...].astype(jnp.float32), acc_ref.shape)

    # First matmul + bias + ReLU for this hidden-dim block (f32 accumulate).
    h = jnp.dot(x_ref[...], w1_ref[...], preferred_element_type=jnp.float32)
    h = jnp.maximum(h + b1_ref[...].astype(jnp.float32), 0.0)

    # Partial second matmul: accumulate this hidden block's contribution.
    acc_ref[...] += jnp.dot(h.astype(w2_ref.dtype), w2_ref[...],
                            preferred_element_type=jnp.float32)

    @pl.when(hk == pl.num_programs(1) - 1)
    def _finalize():
        # Dropout: eval-mode => identity (no masking / scaling).
        o_ref[...] = acc_ref[...].astype(o_ref.dtype)


def feed_forward(x, w1, b1, w2, b2, *, tm=256, th=512):
    """GPT FeedForward forward pass.

    x : (B, T, C)
    w1: (C, H)   b1: (H,) or (1, H)      with H = 4*C
    w2: (H, C)   b2: (C,) or (1, C)
    tm: row tile (use 128 on v5e, 256 on v6e/v7x); th: hidden-dim tile.
    Weights may be bf16; accumulation is always f32.
    """
    B, T, C = x.shape
    Cw, H = w1.shape
    assert Cw == C and w2.shape == (H, C)
    M = B * T
    x2d = x.reshape(M, C)

    # Clamp tiles to the problem size (toy shapes) and check divisibility.
    tm = min(tm, M)
    th = min(th, H)
    assert M % tm == 0, "row tile must divide B*T"
    assert H % th == 0, "hidden tile must divide 4*n_embd"
    assert tm == M or tm % 8 == 0, "row tile must be sublane-aligned"

    b1 = b1.reshape(1, H)
    b2 = b2.reshape(1, C)

    # Advisory cost hint for XLA scheduling around the custom call.
    flops = 4 * M * C * H  # two (M,C,H)-sized matmuls
    bytes_accessed = int(
        x2d.size * x2d.dtype.itemsize
        + w1.size * w1.dtype.itemsize + b1.size * b1.dtype.itemsize
        + w2.size * w2.dtype.itemsize + b2.size * b2.dtype.itemsize
        + M * C * x.dtype.itemsize)

    out2d = pl.pallas_call(
        ffwd_kernel,
        out_shape=jax.ShapeDtypeStruct((M, C), x.dtype),
        grid_spec=pltpu.PrefetchScalarGridSpec(
            num_scalar_prefetch=0,
            grid=(M // tm, H // th),
            in_specs=[
                pl.BlockSpec((tm, C), lambda i, hk: (i, 0)),   # x rows
                pl.BlockSpec((C, th), lambda i, hk: (0, hk)),  # W1 hidden block
                pl.BlockSpec((1, th), lambda i, hk: (0, hk)),  # b1 hidden block
                pl.BlockSpec((th, C), lambda i, hk: (hk, 0)),  # W2 hidden block
                pl.BlockSpec((1, C), lambda i, hk: (0, 0)),    # b2 (constant)
            ],
            out_specs=pl.BlockSpec((tm, C), lambda i, hk: (i, 0)),
            scratch_shapes=[pltpu.VMEM((tm, C), jnp.float32)],  # f32 accumulator
        ),
        compiler_params=pltpu.CompilerParams(
            # rows parallel (megacore), hidden axis is a reduction.
            dimension_semantics=("parallel", "arbitrary")),
        cost_estimate=pl.CostEstimate(
            flops=flops, transcendentals=0, bytes_accessed=bytes_accessed),
    )(x2d, w1, b1, w2, b2)

    return out2d.reshape(B, T, C)


def feed_forward_ref(x, w1, b1, w2, b2):
    h = jnp.maximum(x @ w1 + b1.reshape(-1), 0.0)
    return h @ w2 + b2.reshape(-1)


if __name__ == "__main__":
    # Small shapes consistent with a GPT block: batch=2, seq=8, n_embd=32.
    B, T, C = 2, 8, 32
    H = 4 * C

    key = jax.random.PRNGKey(0)
    kx, kw1, kb1, kw2, kb2 = jax.random.split(key, 5)

    x = jax.random.normal(kx, (B, T, C), dtype=jnp.float32)

    # PyTorch Linear stores weight as (out, in); generate that then transpose
    # to (in, out) so the kernel computes x @ W (== x @ weight.T + bias).
    bound1 = 1.0 / jnp.sqrt(C)
    w1_pt = jax.random.uniform(kw1, (H, C), minval=-bound1, maxval=bound1)
    b1_pt = jax.random.uniform(kb1, (H,), minval=-bound1, maxval=bound1)
    bound2 = 1.0 / jnp.sqrt(H)
    w2_pt = jax.random.uniform(kw2, (C, H), minval=-bound2, maxval=bound2)
    b2_pt = jax.random.uniform(kb2, (C,), minval=-bound2, maxval=bound2)

    w1 = jnp.asarray(w1_pt.T, dtype=jnp.float32)   # (C, H)
    b1 = jnp.asarray(b1_pt, dtype=jnp.float32)     # (H,)
    w2 = jnp.asarray(w2_pt.T, dtype=jnp.float32)   # (H, C)
    b2 = jnp.asarray(b2_pt, dtype=jnp.float32)     # (C,)

    # f32 path: exact check against the reference.
    y = feed_forward(x, w1, b1, w2, b2)
    y = jax.block_until_ready(y)
    y_ref = feed_forward_ref(x, w1, b1, w2, b2)
    assert y.shape == (B, T, C)
    assert jnp.allclose(y, y_ref, atol=1e-5, rtol=1e-5), "f32 mismatch vs reference"

    # bf16 params/activations path (MXU-native): f32 accumulation inside the
    # kernel; sanity-check only (bf16 rounding makes a tight check meaningless).
    y_bf16 = feed_forward(x.astype(jnp.bfloat16),
                          w1.astype(jnp.bfloat16), b1,
                          w2.astype(jnp.bfloat16), b2)
    y_bf16 = jax.block_until_ready(y_bf16)
    assert y_bf16.shape == (B, T, C)
    assert bool(jnp.all(jnp.isfinite(y_bf16.astype(jnp.float32))))

    print("KERNEL_OK")
</pallas_src>

<mosaic_0001>
module attributes {stable_mosaic.version = 11 : i64} {
  func.func @ffwd_kernel(%arg0: i32, %arg1: i32, %arg2: memref<16x32xf32, #tpu.memory_space<vmem>>, %arg3: memref<32x128xf32, #tpu.memory_space<vmem>>, %arg4: memref<1x128xf32, #tpu.memory_space<vmem>>, %arg5: memref<128x32xf32, #tpu.memory_space<vmem>>, %arg6: memref<1x32xf32, #tpu.memory_space<vmem>>, %arg7: memref<16x32xf32, #tpu.memory_space<vmem>>, %arg8: memref<16x32xf32, #tpu.memory_space<vmem>>) attributes {dimension_semantics = [#tpu.dimension_semantics<parallel>, #tpu.dimension_semantics<arbitrary>], iteration_bounds = array<i64: 1, 1>, scalar_prefetch = 0 : i64, scratch_operands = 1 : i64, tpu.core_type = #tpu.core_type<tc>, window_params = [{transform_indices = @transform_0, window_bounds = array<i64: 16, 32>}, {transform_indices = @transform_1, window_bounds = array<i64: 32, 128>}, {transform_indices = @transform_2, window_bounds = array<i64: 1, 128>}, {transform_indices = @transform_3, window_bounds = array<i64: 128, 32>}, {pipeline_mode = #tpu.pipeline_mode<synchronous>, transform_indices = @transform_4, window_bounds = array<i64: 1, 32>}, {transform_indices = @transform_5, window_bounds = array<i64: 16, 32>}]} {
    %c0_i32 = arith.constant 0 : i32
    %0 = arith.cmpi eq, %arg1, %c0_i32 : i32
    %1 = arith.extui %0 : i1 to i32
    %c0_i32_0 = arith.constant 0 : i32
    %2 = arith.cmpi ne, %1, %c0_i32_0 : i32
    scf.if %2 {
      %c0_16 = arith.constant 0 : index
      %c0_17 = arith.constant 0 : index
      %19 = vector.load %arg6[%c0_16, %c0_17] : memref<1x32xf32, #tpu.memory_space<vmem>>, vector<1x32xf32>
      %20 = vector.shape_cast %19 : vector<1x32xf32> to vector<1x32xf32>
      %21 = vector.broadcast %20 : vector<1x32xf32> to vector<16x32xf32>
      %c0_18 = arith.constant 0 : index
      %c0_19 = arith.constant 0 : index
      %22 = vector.load %arg8[%c0_18, %c0_19] : memref<16x32xf32, #tpu.memory_space<vmem>>, vector<16x32xf32>
      tpu.vector_store %arg8[%c0_18, %c0_19], %21 {strides = array<i32>} : memref<16x32xf32, #tpu.memory_space<vmem>>, vector<16x32xf32>,
    } else {
    }
    %c0 = arith.constant 0 : index
    %c0_1 = arith.constant 0 : index
    %3 = vector.load %arg2[%c0, %c0_1] : memref<16x32xf32, #tpu.memory_space<vmem>>, vector<16x32xf32>
    %c0_2 = arith.constant 0 : index
    %c0_3 = arith.constant 0 : index
    %4 = vector.load %arg3[%c0_2, %c0_3] : memref<32x128xf32, #tpu.memory_space<vmem>>, vector<32x128xf32>
    %cst = arith.constant dense<0.000000e+00> : vector<16x128xf32>
    %5 = tpu.matmul %3, %4, %cst {dimension_numbers = #tpu.dot_dimension_numbers<[1], [0], [0], [1], [0, 0, 1, 1], [], []>} : vector<16x32xf32>, vector<32x128xf32>, vector<16x128xf32> -> vector<16x128xf32>
    %c0_4 = arith.constant 0 : index
    %c0_5 = arith.constant 0 : index
    %6 = vector.load %arg4[%c0_4, %c0_5] : memref<1x128xf32, #tpu.memory_space<vmem>>, vector<1x128xf32>
    %7 = vector.broadcast %6 : vector<1x128xf32> to vector<16x128xf32>
    %8 = arith.addf %5, %7 : vector<16x128xf32>
    %cst_6 = arith.constant 0.000000e+00 : f32
    %9 = vector.broadcast %cst_6 : f32 to vector<16x128xf32>
    %10 = arith.maximumf %8, %9 : vector<16x128xf32>
    %c0_7 = arith.constant 0 : index
    %c0_8 = arith.constant 0 : index
    %11 = vector.load %arg8[%c0_7, %c0_8] : memref<16x32xf32, #tpu.memory_space<vmem>>, vector<16x32xf32>
    %c0_9 = arith.constant 0 : index
    %c0_10 = arith.constant 0 : index
    %12 = vector.load %arg5[%c0_9, %c0_10] : memref<128x32xf32, #tpu.memory_space<vmem>>, vector<128x32xf32>
    %cst_11 = arith.constant dense<0.000000e+00> : vector<16x32xf32>
    %13 = tpu.matmul %10, %12, %cst_11 {dimension_numbers = #tpu.dot_dimension_numbers<[1], [0], [0], [1], [0, 0, 1, 1], [], []>} : vector<16x128xf32>, vector<128x32xf32>, vector<16x32xf32> -> vector<16x32xf32>
    %14 = arith.addf %11, %13 : vector<16x32xf32>
    %c0_12 = arith.constant 0 : index
    %c0_13 = arith.constant 0 : index
    %15 = vector.load %arg8[%c0_12, %c0_13] : memref<16x32xf32, #tpu.memory_space<vmem>>, vector<16x32xf32>
    tpu.vector_store %arg8[%c0_12, %c0_13], %14 {strides = array<i32>} : memref<16x32xf32, #tpu.memory_space<vmem>>, vector<16x32xf32>,
    %c0_i32_14 = arith.constant 0 : i32
    %16 = arith.cmpi eq, %arg1, %c0_i32_14 : i32
    %17 = arith.extui %16 : i1 to i32
    %c0_i32_15 = arith.constant 0 : i32
    %18 = arith.cmpi ne, %17, %c0_i32_15 : i32
    scf.if %18 {
      %c0_16 = arith.constant 0 : index
      %c0_17 = arith.constant 0 : index
      %19 = vector.load %arg8[%c0_16, %c0_17] : memref<16x32xf32, #tpu.memory_space<vmem>>, vector<16x32xf32>
      %c0_18 = arith.constant 0 : index
      %c0_19 = arith.constant 0 : index
      %20 = vector.load %arg7[%c0_18, %c0_19] : memref<16x32xf32, #tpu.memory_space<vmem>>, vector<16x32xf32>
      tpu.vector_store %arg7[%c0_18, %c0_19], %19 {strides = array<i32>} : memref<16x32xf32, #tpu.memory_space<vmem>>, vector<16x32xf32>,
    } else {
    }
    return
  }
  func.func @transform_0(%arg0: i32, %arg1: i32) -> (i32, i32) {
    %c0_i32 = arith.constant 0 : i32
    %c0_i32_0 = arith.constant 0 : i32
    return %arg0, %c0_i32 : i32, i32
  }
  func.func @transform_1(%arg0: i32, %arg1: i32) -> (i32, i32) {
    %c0_i32 = arith.constant 0 : i32
    %c0_i32_0 = arith.constant 0 : i32
    return %c0_i32, %arg1 : i32, i32
  }
  func.func @transform_2(%arg0: i32, %arg1: i32) -> (i32, i32) {
    %c0_i32 = arith.constant 0 : i32
    %c0_i32_0 = arith.constant 0 : i32
    return %c0_i32, %arg1 : i32, i32
  }
  func.func @transform_3(%arg0: i32, %arg1: i32) -> (i32, i32) {
    %c0_i32 = arith.constant 0 : i32
    %c0_i32_0 = arith.constant 0 : i32
    return %arg1, %c0_i32 : i32, i32
  }
  func.func @transform_4(%arg0: i32, %arg1: i32) -> (i32, i32) {
    %c0_i32 = arith.constant 0 : i32
    %c0_i32_0 = arith.constant 0 : i32
    %c0_i32_1 = arith.constant 0 : i32
    return %c0_i32, %c0_i32_0 : i32, i32
  }
  func.func @transform_5(%arg0: i32, %arg1: i32) -> (i32, i32) {
    %c0_i32 = arith.constant 0 : i32
    %c0_i32_0 = arith.constant 0 : i32
    return %arg0, %c0_i32 : i32, i32
  }
}

</mosaic_0001>

<bundles_post_ra>
// kernel: tpu_custom_call.1
= control target key start
LH: loop header
LB: loop body
LE: loop exit
PB: predicated region body
PF: predicated region fallthrough
CT: control target
= control target key end

     0   :  { %vm29_vm0 = vcmask 261120   ;;  %s309_s0 = inlined_call_operand.vmem [shape: f32[16,32], index: 0, kind: input, shape index: {}]   ;;  %s310_s1 = inlined_call_operand.vmem [shape: f32[32,128], index: 1, kind: input, shape index: {}]   ;;  %s311_s2 = inlined_call_operand.vmem [shape: f32[1,128], index: 2, kind: input, shape index: {}]   ;;  %s312_s3 = inlined_call_operand.vmem [shape: f32[128,32], index: 3, kind: input, shape index: {}]   ;;  %s313_s4 = inlined_call_operand.vmem [shape: f32[1,32], index: 4, kind: input, shape index: {}]   ;;  %s314_s5 = inlined_call_operand.hbm [shape: f32[16,32], index: 5, kind: output, shape index: {}]  }
   0x1   :  { %v37_v0 = vld [vmem:[%s310_s1 + $0x18] sm:$0xff]  ;;  %v36_v1 = vld [vmem:[%s310_s1 + $0x10] sm:$0xff]  ;;  %v35_v2 = vld [vmem:[%s310_s1 + $0x8] sm:$0xff] }
   0x2   :  { %61 = vmatpush.msra.mxu0 %v37_v0  ;;  %v91_v3 = vld [vmem:[%s312_s3 + $0x78] sm:$0xff]  ;;  %v90_v4 = vld [vmem:[%s312_s3 + $0x70] sm:$0xff]  ;;  %v34_v5 = vld [vmem:[%s310_s1] sm:$0xff] }
   0x3   :  { %92 = vmatpush.msra.mxu1 %v91_v3  ;;  %v89_v6 = vld [vmem:[%s312_s3 + $0x68] sm:$0xff]  ;;  %146 = vmatpush.msra.mxu2 %v91_v3  ;;  %v32_v7 = vld [vmem:[%s309_s0] sm:$0xff] }
   0x4   :  { %62 = vmatpush.msra.mxu0 %v36_v1  ;;  %v88_v8 = vld [vmem:[%s312_s3 + $0x60] sm:$0xff] }
   0x5   :  { %93 = vmatpush.msra.mxu1 %v90_v4  ;;  %147 = vmatpush.msra.mxu2 %v90_v4 }
   0x6   :  { %63 = vmatpush.msra.mxu0 %v35_v2 }
   0x7   :  { %94 = vmatpush.msra.mxu1 %v89_v6 }
   0x8   :  { %64 = vmatpush.msra.mxu0 %v34_v5 }
   0x9   :  { %10 = vsyncpa [#allocation4], 0  ;;  %144 = vmatmul.msk.f32.vlgmr.msra.gmra.mxu0 %vm29_vm0, %v32_v7  ;;  %v87_v9 = vld [vmem:[%s312_s3 + $0x58] sm:$0xff]  ;;  %148 = vmatpush.msra.mxu2 %v89_v6  ;;  %v86_v10 = vld [vmem:[%s312_s3 + $0x50] sm:$0xff]  ;;  %s132_s14 = sshll.u32 %s314_s5, 4  ;;  %s194_s15 = smov 128   ;;  %s133_s14 = int_to_ptr.hbm [resolvable:$true] %s132_s14 }
   0xa   :  { %95 = vmatpush.msra.mxu1 %v88_v8  ;;  %v85_v11 = vld [vmem:[%s312_s3 + $0x48] sm:$0xff]  ;;  %v84_v13 = vld [vmem:[%s312_s3 + $0x40] sm:$0xff]  ;;  %v83_v14 = vld [vmem:[%s312_s3 + $0x38] sm:$0xff]  ;;  %s195_s16 = smov 8  }
   0xb   :  { %149 = vmatpush.msra.mxu2 %v88_v8  ;;  %v33_v12 = vld [vmem:[%s309_s0 + $0x8] sm:$0xff]  ;;  %v82_v15 = vld [vmem:[%s312_s3 + $0x30] sm:$0xff]  ;;  %v80_v17 = vld [vmem:[%s312_s3 + $0x20] sm:$0xff] }
   0xc   :  { %96 = vmatpush.msra.mxu1 %v87_v9  ;;  %v81_v16 = vld [vmem:[%s312_s3 + $0x28] sm:$0xff]  ;;  %v79_v18 = vld [vmem:[%s312_s3 + $0x18] sm:$0xff]  ;;  %v78_v19 = vld [vmem:[%s312_s3 + $0x10] sm:$0xff] }
   0xd   :  { %150 = vmatpush.msra.mxu2 %v87_v9  ;;  %v77_v20 = vld [vmem:[%s312_s3 + $0x8] sm:$0xff]  ;;  %v76_v21 = vld [vmem:[%s312_s3] sm:$0xff] }
   0xe   :  { %97 = vmatpush.msra.mxu1 %v86_v10  ;;  %v166_v22 = vld [vmem:[%s313_s4] ss:$0 sm:$0xff] }
   0xf   :  { %151 = vmatpush.msra.mxu2 %v86_v10  ;;  %30 = vst.msk [vmem:[#allocation2] sm:$0xff] %vm29_vm0, %v166_v22  ;;  %v165_v23 = vld [vmem:[%s311_s2] ss:$0 sm:$0xff]  ;;  %s193_s2 = smov [#allocation3]  }
  0x10   :  { %98 = vmatpush.msra.mxu1 %v85_v11  ;;  %31 = vst.msk [vmem:[#allocation2 + $0x8] sm:$0xff] %vm29_vm0, %v166_v22  ;;  %s130_s3 = sshll.u32 %s193_s2, 4  ;;  %s131_s3 = int_to_ptr.vmem [resolvable:$true] %s130_s3 }
  0x11   :  { %145 = vmatmul.msk.f32.gmra.mxu0 %vm29_vm0, %v33_v12  ;;  %152 = vmatpush.msra.mxu2 %v85_v11 }
  0x12   :  { %99 = vmatpush.msra.mxu1 %v84_v13 }
  0x13   :  { %153 = vmatpush.msra.mxu2 %v84_v13 }
  0x14   :  { %100 = vmatpush.msra.mxu1 %v83_v14 }
  0x15   :  { %154 = vmatpush.msra.mxu2 %v83_v14 }
  0x16   :  { %101 = vmatpush.msra.mxu1 %v82_v15  ;;  %v74_v30 = vld [vmem:[#allocation2] sm:$0xff] }
  0x17   :  { %155 = vmatpush.msra.mxu2 %v82_v15  ;;  %v75_v34 = vld [vmem:[#allocation2 + $0x8] sm:$0xff] }
  0x18   :  { %102 = vmatpush.msra.mxu1 %v81_v16 }
  0x19   :  { %156 = vmatpush.msra.mxu2 %v81_v16 }
  0x1a   :  { %103 = vmatpush.msra.mxu1 %v80_v17 }
  0x1b   :  { %157 = vmatpush.msra.mxu2 %v80_v17 }
  0x1c   :  { %104 = vmatpush.msra.mxu1 %v79_v18 }
  0x1d   :  { %158 = vmatpush.msra.mxu2 %v79_v18 }
  0x1e   :  { %105 = vmatpush.msra.mxu1 %v78_v19 }
  0x1f   :  { %159 = vmatpush.msra.mxu2 %v78_v19 }
  0x20   :  { %106 = vmatpush.msra.mxu1 %v77_v20 }
  0x21   :  { %160 = vmatpush.msra.mxu2 %v77_v20 }
  0x22   :  { %107 = vmatpush.msra.mxu1 %v76_v21 }
  0x23   :  { %161 = vmatpush.msra.mxu2 %v76_v21 }
  0x86   :  { %v66_v24 = vpop.f32.mrf.mxu0 }
  0x87   :  { %v67_v25 = vadd.f32 %v165_v23, %v66_v24 }
  0x89   :  { %v72_v26 = vmax.f32 %v67_v25, 0.0 }
  0x8b   :  { %108 = vmatmul.f32.vlgmr.msra.gmra.mxu1 %v72_v26 }
  0x8e   :  { %v69_v27 = vpop.f32.mrf.mxu0 }
  0x8f   :  { %v70_v28 = vadd.f32 %v165_v23, %v69_v27 }
  0x91   :  { %v73_v29 = vmax.f32 %v70_v28, 0.0 }
  0x93   :  { %111 = vmatmul.f32.vlgmr.msra.gmra.mxu2 %v73_v29 }
 0x108   :  { %v109_v31 = vpop.f32.mrf.mxu1 }
 0x109   :  { %v115_v32 = vadd.f32 %v109_v31, %v74_v30 }
 0x10b   :  { %117 = vst.msk [vmem:[#allocation2] sm:$0xff] %vm29_vm0, %v115_v32 }
 0x112   :  { %v122_v33 = vld [vmem:[#allocation2] sm:$0xff] }
 0x113   :  { %124 = vst.msk [vmem:[#allocation3] sm:$0xff] %vm29_vm0, %v122_v33 }
 0x116   :  { %v112_v35 = vpop.f32.mrf.mxu2 }
 0x117   :  { %v116_v36 = vadd.f32 %v112_v35, %v75_v34 }
 0x119   :  { %118 = vst.msk [vmem:[#allocation2 + $0x8] sm:$0xff] %vm29_vm0, %v116_v36 }
 0x120   :  { %v123_v37 = vld [vmem:[#allocation2 + $0x8] sm:$0xff] }
 0x121   :  { %125 = vst.msk [vmem:[#allocation3 + $0x8] sm:$0xff] %vm29_vm0, %v123_v37 }
 0x122   :  { %138 = dma.vmem_to_hbm [thread:$0]  %s131_s3, 256, %s133_s14, [#allocation4], %s194_s15, %s194_s15, %s195_s16  }
 0x123   :  { %191 = dma.done.wait [#allocation4], 256  }
 0x124   :  { %192 = vsyncadd [#allocation4], 4294967040 }
 0x125   :  { %143 = vsyncpa [#allocation4], 1 }

</bundles_post_ra>
